<compile_context>
chip_gen: v6e
topology: v6e:2x2x1
jax: 0.10.0
libtpu: 0.0.40
codegen_flags: <defaults>
</compile_context>

<pallas_src>
import functools
import math

import jax
import jax.numpy as jnp
from jax.experimental import pallas as pl
from jax.experimental.pallas import tpu as pltpu


def _pow_weight(one_minus, gamma):
    """(1 - p)^gamma without jnp.power for common gammas (saves EUP exp+log)."""
    if gamma == 0.0:
        return jnp.ones_like(one_minus)
    if gamma == 0.5:
        return jnp.sqrt(one_minus)
    if gamma == 1.0:
        return one_minus
    if gamma == 2.0:
        return one_minus * one_minus
    if gamma == 3.0:
        return one_minus * one_minus * one_minus
    if gamma == 4.0:
        sq = one_minus * one_minus
        return sq * sq
    return jnp.power(one_minus, gamma)


def _focal_kernel(logits_ref, tgt_ref, out_ref, acc_ref, *,
                  alpha, gamma, eps, onehot_eps, tile_hw, hw_valid,
                  tiles_per_chunk, need_mask):
    """One (chunk, n, hw_tile) grid step.

    logits_ref: (1, C, TILE_HW)  original dtype
    tgt_ref   : (1, 1, TILE_HW)  int32
    out_ref   : (1, 1, 128)      f32 per-(chunk, n) partial sum (broadcast scalar)
    acc_ref   : (1, TILE_HW)     f32 per-pixel loss accumulator (persists over t)
    """
    t = pl.program_id(2)
    n_t = pl.num_programs(2)

    @pl.when(t == 0)
    def _():
        acc_ref[...] = jnp.zeros_like(acc_ref)

    x = logits_ref[0].astype(jnp.float32)                    # (C, TILE_HW)
    C = x.shape[0]

    # softmax over the class axis (axis 0); log via log-sum-exp (one log / pixel)
    m = jnp.max(x, axis=0, keepdims=True)                    # (1, TILE_HW)
    xm = x - m                                               # (C, TILE_HW)
    e = jnp.exp(xm)                                          # (C, TILE_HW)
    denom = jnp.sum(e, axis=0, keepdims=True)                # (1, TILE_HW)
    p = e * pl.reciprocal(denom, approx=False) + eps         # softmax + eps
    log_p = xm - jnp.log(denom)                              # log(softmax)
    log_p = jnp.maximum(log_p, math.log(eps))                # ~= log(softmax + eps)

    # focal = -alpha * (1 - p)^gamma * log(p)
    w = _pow_weight(1.0 - p, gamma)
    focal = (-alpha) * w * log_p                             # (C, TILE_HW)

    # sum_C((one_hot + 1e-6) * focal) = focal[target] + 1e-6 * sum_C(focal)
    tgt = tgt_ref[0]                                         # (1, TILE_HW) int32
    cls = jax.lax.broadcasted_iota(jnp.int32, (C, 1), 0)     # (C, 1) sublane iota
    sel = jnp.sum(jnp.where(cls == tgt, focal, 0.0), axis=0, keepdims=True)
    tot = jnp.sum(focal, axis=0, keepdims=True)
    loss_px = sel + onehot_eps * tot                         # (1, TILE_HW)

    if need_mask:
        # Partial / clamped tiles: OOB columns hold undefined data; use a select
        # (not multiply) so NaN/Inf in those columns cannot poison the sum.
        g = pl.program_id(0) * tiles_per_chunk + t           # logical tile index
        col = g * tile_hw + jax.lax.broadcasted_iota(jnp.int32, (1, tile_hw), 1)
        loss_px = jnp.where(col < hw_valid, loss_px, 0.0)

    acc_ref[...] += loss_px

    @pl.when(t == n_t - 1)
    def _():
        total = jnp.sum(acc_ref[...])                        # one lane reduce per group
        out_ref[...] = jnp.full(out_ref.shape, total, dtype=out_ref.dtype)


def _pick_tile_hw(hw, c, in_itemsize, budget_bytes=20 << 20):
    """Lane tile: multiple of 128, sized by a VMEM working-set byte budget.

    Per-lane bytes: 2x double-buffered logits block, 2x int32 target block,
    (1,TILE) f32 accumulator padded to 8 sublanes, ~5 live (C,TILE) f32 temps
    across the softmax reductions.
    """
    per_lane = 2 * c * in_itemsize + 2 * 4 + 8 * 4 + 5 * c * 4
    t = budget_bytes // max(1, per_lane)
    t = max(128, (t // 128) * 128)
    hw128 = ((hw + 127) // 128) * 128
    return min(t, hw128)


def focal_loss_mean(logits_nchw, target_nhw, alpha, gamma=2.0,
                    eps=1e-8, onehot_eps=1e-6, tile_hw=None):
    """FocalLoss(alpha, gamma, reduction='mean') forward.

    logits_nchw: (N, C, H, W) float (any float dtype; per-tile f32 cast in VMEM)
    target_nhw : (N, H, W)    integer class indices in [0, C)
    returns scalar float32 loss
    """
    N, C, H, W = logits_nchw.shape
    HW = H * W

    if tile_hw is None:
        tile_hw = _pick_tile_hw(HW, C, jnp.dtype(logits_nchw.dtype).itemsize)
    tile_hw = int(tile_hw)

    # NCHW-native views: no transpose, no pad, no wrapper upcast.
    x3d = logits_nchw.reshape(N, C, HW)
    t3d = target_nhw.reshape(N, 1, HW).astype(jnp.int32)

    num_blocks = pl.cdiv(HW, tile_hw)                # hw tiles (last may be partial)
    num_chunks = 2 if num_blocks >= 2 else 1         # megacore work even when N == 1
    tpc = pl.cdiv(num_blocks, num_chunks)            # tiles per chunk
    # Mask needed iff any grid step covers columns >= HW (partial tile or
    # excess clamped steps from uneven chunking).
    need_mask = (num_chunks * tpc * tile_hw != HW)

    if num_chunks * tpc == num_blocks:
        def in_idx(c_, n_, t_):
            return (n_, 0, c_ * tpc + t_)
    else:
        def in_idx(c_, n_, t_):
            # Excess steps re-read the last valid block; their columns are
            # fully masked in-kernel, so the data read there is irrelevant.
            return (n_, 0, jnp.minimum(c_ * tpc + t_, num_blocks - 1))

    kernel = functools.partial(
        _focal_kernel,
        alpha=float(alpha), gamma=float(gamma),
        eps=float(eps), onehot_eps=float(onehot_eps),
        tile_hw=tile_hw, hw_valid=int(HW),
        tiles_per_chunk=int(tpc), need_mask=bool(need_mask),
    )

    partials = pl.pallas_call(
        kernel,
        out_shape=jax.ShapeDtypeStruct((num_chunks * N, 1, 128), jnp.float32),
        grid_spec=pltpu.PrefetchScalarGridSpec(
            num_scalar_prefetch=0,
            grid=(num_chunks, N, tpc),
            in_specs=[
                pl.BlockSpec((1, C, tile_hw), in_idx),
                pl.BlockSpec((1, 1, tile_hw), in_idx),
            ],
            out_specs=pl.BlockSpec((1, 1, 128), lambda c_, n_, t_: (c_ * N + n_, 0, 0)),
            scratch_shapes=[pltpu.VMEM((1, tile_hw), jnp.float32)],
        ),
        compiler_params=pltpu.CompilerParams(
            dimension_semantics=("parallel", "parallel", "arbitrary"),
            vmem_limit_bytes=48 * 1024 * 1024),
    )(x3d, t3d)

    # Each group's partial sum is broadcast over 128 lanes; take lane 0 of each.
    return jnp.sum(partials[:, 0, 0]) / float(N * HW)


def _reference_focal_loss_mean(logits_nchw, target_nhw, alpha, gamma=2.0,
                               eps=1e-8, onehot_eps=1e-6):
    """Pure-JAX reference mirroring the PyTorch code (for verification)."""
    C = logits_nchw.shape[1]
    p = jax.nn.softmax(logits_nchw.astype(jnp.float32), axis=1) + eps
    oh = jax.nn.one_hot(target_nhw, C, axis=1, dtype=jnp.float32) + onehot_eps
    focal = -alpha * jnp.power(1.0 - p, gamma) * jnp.log(p)
    loss_px = jnp.sum(oh * focal, axis=1)
    return jnp.mean(loss_px)


if __name__ == "__main__":
    # Module hyper-params (FocalLoss(alpha, gamma=2.0, reduction='mean', eps=1e-8))
    alpha, gamma, eps = 0.5, 2.0, 1e-8

    key = jax.random.PRNGKey(0)
    k_x, k_t = jax.random.split(key)

    # Case 1: N=2, C=4, H=W=16 -> input (2,4,16,16), target (2,16,16)
    N, C, H, W = 2, 4, 16, 16
    logits = jax.random.normal(k_x, (N, C, H, W), dtype=jnp.float32)
    target = jax.random.randint(k_t, (N, H, W), 0, C)
    loss = jax.block_until_ready(
        focal_loss_mean(logits, target, alpha=alpha, gamma=gamma, eps=eps))
    ref = _reference_focal_loss_mean(logits, target, alpha=alpha, gamma=gamma, eps=eps)
    assert jnp.allclose(loss, ref, rtol=1e-5, atol=1e-6), (loss, ref)

    # Case 2: non-128-divisible spatial size (partial-block mask path, no padding).
    H2, W2 = 13, 11
    logits2 = jax.random.normal(k_x, (N, C, H2, W2), dtype=jnp.float32)
    target2 = jax.random.randint(k_t, (N, H2, W2), 0, C)
    loss2 = jax.block_until_ready(
        focal_loss_mean(logits2, target2, alpha=alpha, gamma=gamma, eps=eps))
    ref2 = _reference_focal_loss_mean(logits2, target2, alpha=alpha, gamma=gamma, eps=eps)
    assert jnp.allclose(loss2, ref2, rtol=1e-5, atol=1e-6), (loss2, ref2)

    # Case 3: N=1, forced small tile_hw -> exercises the multi-tile accumulator,
    # the 2-chunk parallel axis, clamped excess tiles, and the lane mask.
    H3, W3 = 24, 24
    logits3 = jax.random.normal(k_x, (1, C, H3, W3), dtype=jnp.float32)
    target3 = jax.random.randint(k_t, (1, H3, W3), 0, C)
    loss3 = jax.block_until_ready(
        focal_loss_mean(logits3, target3, alpha=alpha, gamma=gamma, eps=eps,
                        tile_hw=128))
    ref3 = _reference_focal_loss_mean(logits3, target3, alpha=alpha, gamma=gamma, eps=eps)
    assert jnp.allclose(loss3, ref3, rtol=1e-5, atol=1e-6), (loss3, ref3)

    print("KERNEL_OK")
</pallas_src>

<mosaic_0001>
module attributes {stable_mosaic.version = 11 : i64} {
  func.func @_focal_kernel(%arg0: i32, %arg1: i32, %arg2: i32, %arg3: memref<1x4x256xf32, #tpu.memory_space<vmem>>, %arg4: memref<1x1x256xi32, #tpu.memory_space<vmem>>, %arg5: memref<1x1x128xf32, #tpu.memory_space<vmem>>, %arg6: memref<1x256xf32, #tpu.memory_space<vmem>>) attributes {dimension_semantics = [#tpu.dimension_semantics<parallel>, #tpu.dimension_semantics<parallel>, #tpu.dimension_semantics<arbitrary>], iteration_bounds = array<i64: 1, 2, 1>, scalar_prefetch = 0 : i64, scratch_operands = 1 : i64, tpu.core_type = #tpu.core_type<tc>, window_params = [{transform_indices = @transform_0, window_bounds = array<i64: 1, 4, 256>}, {transform_indices = @transform_1, window_bounds = array<i64: 1, 1, 256>}, {transform_indices = @transform_2, window_bounds = array<i64: 1, 1, 128>}]} {
    %c0_i32 = arith.constant 0 : i32
    %0 = arith.cmpi eq, %arg2, %c0_i32 : i32
    %1 = arith.extui %0 : i1 to i32
    %c0_i32_0 = arith.constant 0 : i32
    %2 = arith.cmpi ne, %1, %c0_i32_0 : i32
    scf.if %2 {
      %cst_21 = arith.constant 0.000000e+00 : f32
      %49 = vector.broadcast %cst_21 : f32 to vector<1x256xf32>
      %c0_22 = arith.constant 0 : index
      %c0_23 = arith.constant 0 : index
      %50 = vector.load %arg6[%c0_22, %c0_23] : memref<1x256xf32, #tpu.memory_space<vmem>>, vector<1x256xf32>
      tpu.vector_store %arg6[%c0_22, %c0_23], %49 {strides = array<i32>} : memref<1x256xf32, #tpu.memory_space<vmem>>, vector<1x256xf32>,
    } else {
    }
    %c0 = arith.constant 0 : index
    %c0_1 = arith.constant 0 : index
    %c0_2 = arith.constant 0 : index
    %3 = vector.load %arg3[%c0, %c0_1, %c0_2] : memref<1x4x256xf32, #tpu.memory_space<vmem>>, vector<1x4x256xf32>
    %4 = vector.shape_cast %3 : vector<1x4x256xf32> to vector<4x256xf32>
    %cst = arith.constant dense<0xFF800000> : vector<256xf32>
    %5 = vector.multi_reduction <maximumf>, %4, %cst [0] : vector<4x256xf32> to vector<256xf32>
    %6 = vector.shape_cast %5 : vector<256xf32> to vector<1x256xf32>
    %7 = vector.broadcast %6 : vector<1x256xf32> to vector<4x256xf32>
    %8 = arith.subf %4, %7 : vector<4x256xf32>
    %9 = math.exp %8 : vector<4x256xf32>
    %cst_3 = arith.constant dense<0.000000e+00> : vector<256xf32>
    %10 = vector.multi_reduction <add>, %9, %cst_3 [0] : vector<4x256xf32> to vector<256xf32>
    %11 = vector.shape_cast %10 : vector<256xf32> to vector<1x256xf32>
    %12 = tpu.reciprocal %11 : vector<1x256xf32> -> vector<1x256xf32>
    %13 = vector.broadcast %12 : vector<1x256xf32> to vector<4x256xf32>
    %14 = arith.mulf %9, %13 : vector<4x256xf32>
    %cst_4 = arith.constant 9.99999993E-9 : f32
    %15 = vector.broadcast %cst_4 : f32 to vector<4x256xf32>
    %16 = arith.addf %14, %15 : vector<4x256xf32>
    %17 = math.log %11 : vector<1x256xf32>
    %18 = vector.broadcast %17 : vector<1x256xf32> to vector<4x256xf32>
    %19 = arith.subf %8, %18 : vector<4x256xf32>
    %cst_5 = arith.constant -18.420681 : f32
    %20 = vector.broadcast %cst_5 : f32 to vector<4x256xf32>
    %21 = arith.maximumf %19, %20 : vector<4x256xf32>
    %cst_6 = arith.constant 1.000000e+00 : f32
    %22 = vector.broadcast %cst_6 : f32 to vector<4x256xf32>
    %23 = arith.subf %22, %16 : vector<4x256xf32>
    %24 = arith.mulf %23, %23 : vector<4x256xf32>
    %cst_7 = arith.constant -5.000000e-01 : f32
    %25 = vector.broadcast %cst_7 : f32 to vector<4x256xf32>
    %26 = arith.mulf %25, %24 : vector<4x256xf32>
    %27 = arith.mulf %26, %21 : vector<4x256xf32>
    %c0_8 = arith.constant 0 : index
    %c0_9 = arith.constant 0 : index
    %c0_10 = arith.constant 0 : index
    %28 = vector.load %arg4[%c0_8, %c0_9, %c0_10] : memref<1x1x256xi32, #tpu.memory_space<vmem>>, vector<1x1x256xi32>
    %29 = vector.shape_cast %28 : vector<1x1x256xi32> to vector<1x256xi32>
    %30 = tpu.iota {dimensions = array<i32: 0>} : vector<4x1xi32>
    %31 = vector.broadcast %30 : vector<4x1xi32> to vector<4x256xi32>
    %32 = vector.broadcast %29 : vector<1x256xi32> to vector<4x256xi32>
    %33 = arith.cmpi eq, %31, %32 : vector<4x256xi32>
    %cst_11 = arith.constant 0.000000e+00 : f32
    %34 = vector.broadcast %cst_11 : f32 to vector<4x256xf32>
    %35 = arith.select %33, %27, %34 : vector<4x256xi1>, vector<4x256xf32>
    %cst_12 = arith.constant dense<0.000000e+00> : vector<256xf32>
    %36 = vector.multi_reduction <add>, %35, %cst_12 [0] : vector<4x256xf32> to vector<256xf32>
    %37 = vector.shape_cast %36 : vector<256xf32> to vector<1x256xf32>
    %cst_13 = arith.constant dense<0.000000e+00> : vector<256xf32>
    %38 = vector.multi_reduction <add>, %27, %cst_13 [0] : vector<4x256xf32> to vector<256xf32>
    %39 = vector.shape_cast %38 : vector<256xf32> to vector<1x256xf32>
    %cst_14 = arith.constant 9.99999997E-7 : f32
    %40 = vector.broadcast %cst_14 : f32 to vector<1x256xf32>
    %41 = arith.mulf %40, %39 : vector<1x256xf32>
    %42 = arith.addf %37, %41 : vector<1x256xf32>
    %c0_15 = arith.constant 0 : index
    %c0_16 = arith.constant 0 : index
    %43 = vector.load %arg6[%c0_15, %c0_16] : memref<1x256xf32, #tpu.memory_space<vmem>>, vector<1x256xf32>
    %44 = arith.addf %43, %42 : vector<1x256xf32>
    %c0_17 = arith.constant 0 : index
    %c0_18 = arith.constant 0 : index
    %45 = vector.load %arg6[%c0_17, %c0_18] : memref<1x256xf32, #tpu.memory_space<vmem>>, vector<1x256xf32>
    tpu.vector_store %arg6[%c0_17, %c0_18], %44 {strides = array<i32>} : memref<1x256xf32, #tpu.memory_space<vmem>>, vector<1x256xf32>,
    %c0_i32_19 = arith.constant 0 : i32
    %46 = arith.cmpi eq, %arg2, %c0_i32_19 : i32
    %47 = arith.extui %46 : i1 to i32
    %c0_i32_20 = arith.constant 0 : i32
    %48 = arith.cmpi ne, %47, %c0_i32_20 : i32
    scf.if %48 {
      %c0_21 = arith.constant 0 : index
      %c0_22 = arith.constant 0 : index
      %49 = vector.load %arg6[%c0_21, %c0_22] : memref<1x256xf32, #tpu.memory_space<vmem>>, vector<1x256xf32>
      %50 = vector.shape_cast %49 : vector<1x256xf32> to vector<1x1x256xf32>
      %cst_23 = arith.constant dense<0.000000e+00> : vector<1xf32>
      %51 = vector.multi_reduction <add>, %50, %cst_23 [1, 2] : vector<1x1x256xf32> to vector<1xf32>
      %52 = vector.shape_cast %51 : vector<1xf32> to vector<1x1x1xf32>
      %53 = vector.extract %52[0, 0, 0] : f32 from vector<1x1x1xf32>
      %54 = vector.broadcast %53 : f32 to vector<1x1x128xf32>
      %c0_24 = arith.constant 0 : index
      %c0_25 = arith.constant 0 : index
      %c0_26 = arith.constant 0 : index
      %55 = vector.load %arg5[%c0_24, %c0_25, %c0_26] : memref<1x1x128xf32, #tpu.memory_space<vmem>>, vector<1x1x128xf32>
      tpu.vector_store %arg5[%c0_24, %c0_25, %c0_26], %54 {strides = array<i32>} : memref<1x1x128xf32, #tpu.memory_space<vmem>>, vector<1x1x128xf32>,
    } else {
    }
    return
  }
  func.func @transform_0(%arg0: i32, %arg1: i32, %arg2: i32) -> (i32, i32, i32) {
    %c1_i32 = arith.constant 1 : i32
    %0 = arith.muli %arg0, %c1_i32 : i32
    %1 = arith.addi %0, %arg2 : i32
    %c0_i32 = arith.constant 0 : i32
    %c0_i32_0 = arith.constant 0 : i32
    return %arg1, %c0_i32, %1 : i32, i32, i32
  }
  func.func @transform_1(%arg0: i32, %arg1: i32, %arg2: i32) -> (i32, i32, i32) {
    %c1_i32 = arith.constant 1 : i32
    %0 = arith.muli %arg0, %c1_i32 : i32
    %1 = arith.addi %0, %arg2 : i32
    %c0_i32 = arith.constant 0 : i32
    %c0_i32_0 = arith.constant 0 : i32
    return %arg1, %c0_i32, %1 : i32, i32, i32
  }
  func.func @transform_2(%arg0: i32, %arg1: i32, %arg2: i32) -> (i32, i32, i32) {
    %c2_i32 = arith.constant 2 : i32
    %0 = arith.muli %arg0, %c2_i32 : i32
    %1 = arith.addi %0, %arg1 : i32
    %c0_i32 = arith.constant 0 : i32
    %c0_i32_0 = arith.constant 0 : i32
    %c0_i32_1 = arith.constant 0 : i32
    return %1, %c0_i32, %c0_i32_0 : i32, i32, i32
  }
}

</mosaic_0001>

<bundles_post_ra>
// kernel: tpu_custom_call.1
= control target key start
LH: loop header
LB: loop body
LE: loop exit
PB: predicated region body
PF: predicated region fallthrough
CT: control target
= control target key end

     0   :  { %7 = vsyncpa [#allocation4], 0  ;;  %s1003_s0 = inlined_call_operand.hbm [shape: f32[2,4,256], index: 0, kind: input, shape index: {}]   ;;  %s1004_s1 = inlined_call_operand.hbm [shape: s32[2,1,256], index: 1, kind: input, shape index: {}]   ;;  %s1005_s2 = inlined_call_operand.hbm [shape: f32[2,1,128], index: 2, kind: output, shape index: {}]  }
   0x1   :  { %9 = vsyncpa [#allocation4 + $0x1], 0 }
   0x2   :  { %10 = vsyncpa [#allocation7], 0 }
   0x3   :  { %12 = vsyncpa [#allocation7 + $0x1], 0 }
   0x4   :  { %13 = vsyncpa [#allocation5], 0 }
   0x5   :  { %15 = vsyncpa [#allocation5 + $0x1], 0  ;;  %s806_s9 = smov 0   ;;  %s808_s10 = smov 0  }
   0x6   :  { %s810_s11 = smov 0   ;;  %s812_s12 = smov 0  }
   0x7   :  { %s814_s13 = smov 0   ;;  %s816_s14 = smov 0  }
   0x8 LB: > { %s544_s15 = sadd.s32 4294967295, %s784_s14   ;;  %s545_s16 = sadd.s32 4294967294, %s784_s14   ;;  %s784_s14 = sphi %s816_s14, %s21_s14   ;;  %s780_s13 = sphi %s814_s13, %s1019_s13   ;;  %s776_s12 = sphi %s812_s12, %s1018_s12   ;;  %s772_s11 = sphi %s810_s11, %s1017_s11   ;;  %s768_s10 = sphi %s808_s10, %s1016_s10   ;;  %s764_s9 = sphi %s806_s9, %s1015_s9  }
   0x9   : > { %s36_s17 = sadd.s32 1, %s780_s13  ;;  %s51_s18 = sadd.s32 1, %s772_s11 }
   0xa   : > { %p38_p0 = scmp.ge.s32.totalorder %s36_s17, 2  ;;  %p58_p1 = scmp.ne.s32.totalorder %s772_s11, %s768_s10 }
   0xb   : > { %p59_p2 = scmp.eq.s32.totalorder %s784_s14, 0  ;;  %p64_p3 = scmp.ne.s32.totalorder %s768_s10, %s764_s9 }
   0xc   : > { %s1021_s17 = smov (%p38_p0, %s36_s17), 0  ;;  %p65_p5 = scmp.eq.s32.totalorder %s544_s15, 0 }
   0xd   : > { %p847_p4 = por %p59_p2, %p58_p1  ;;  %s46_s20 = ssub.s32 %s780_s13, %s1021_s17 }
   0xe   : > { %p122_p6 = scmp.eq.s32.totalorder %s544_s15, 1  ;;  %p49_p7 = scmp.eq.s32.totalorder %s46_s20, 0 }
   0xf   : > { %p853_p8 = por %p65_p5, %p64_p3  ;;  %p128_p10 = scmp.eq.s32.totalorder %s545_s16, 1 }
  0x10   : > { %p857_p9 = por %p122_p6, %p58_p1  ;;  %p581_p13 = scmp.lt.s32.totalorder %s784_s14, 2 }
  0x11   : > { %s862_s23 = scalar_select %p49_p7, %s772_s11, %s51_s18  }
  0x12   : > { %p864_p11 = por %p128_p10, %p64_p3  ;;  %s871_s25 = sand.u32 1, %s772_s11  }
  0x13   : > { %s548_s26 = sshll.u32 %s871_s25, 3  ;;  %s560_s27 = sshll.u32 %s780_s13, 7 }
  0x14   : > { %s161_s30 = scalar_lea.hbm %s1003_s0, %s560_s27  ;;  %s152_s3 = scalar_lea.vmem [#allocation3], %s548_s26 }
  0x15   : > { %s163_s4 = sshll.u32 %s152_s3, 4  ;;  %p880_p0 = pnand %p581_p13, %p847_p4  ;;  %s164_s4 = int_to_ptr.vmem [resolvable:$true] %s163_s4 }
  0x16   : > { %p554_p1 = scmp.ge.s32.totalorder %s784_s14, 1  ;;  %p190_p2 = scmp.lt.s32.totalorder %s784_s14, 3 }
  0x17   : > { %s149_s6 = scalar_lea.sflag [#allocation4], %s871_s25  ;;  %p646_p3 = pneg %p880_p0 }
  0x18   : > { %s657_s7 = scalar_lea.vmem %s164_s4, 128  ;;  %s786_s8 = smov [#allocation3]  }
  0x19   : > { %p658_p5 = scmp.ne.s32.totalorder %s164_s4, %s657_s7  ;;  %s662_s15 = sshll.u32 %s786_s8, 4  ;;  %s663_s15 = int_to_ptr.vmem [resolvable:$false] %s662_s15 }
  0x1a   : > { %s664_s16 = scalar_lea.vmem %s663_s15, 256  ;;  %p665_p4 = scmp.lt.s32.totalorder %s164_s4, %s663_s15 }
  0x1b   : > { %p660_p6 = pnand %p658_p5, %p646_p3  ;;  %p666_p10 = scmp.lt.s32.totalorder %s664_s16, %s657_s7 }
  0x1d   : > { %p661_p7 = pneg %p660_p6  ;;  %p667_p13 = por %p666_p10, %p665_p4 }
  0x1f   : > { %p668_p12 = pnand %p667_p13, %p661_p7 }
  0x21   : > { %671 = shalt.err (!%p668_p12)
}
  0x22   : > { %573 = dma.hbm_to_vmem [thread:$0]  (!%p880_p0), %s161_s30, 128, %s164_s4, %s149_s6  }
  0x23   : > { %p898_p5 = pnand %p554_p1, %p190_p2  ;;  %s551_s19 = sshll.u32 %s871_s25, 1 }
  0x24   : > { %s561_s20 = sshll.u32 %s780_s13, 5  ;;  %s174_s29 = scalar_lea.vmem [#allocation6], %s551_s19 }
  0x25   : > { %s183_s28 = scalar_lea.hbm %s1004_s1, %s561_s20  ;;  %s185_s3 = sshll.u32 %s174_s29, 4  ;;  %s186_s3 = int_to_ptr.vmem [resolvable:$true] %s185_s3 }
  0x26   : > { %s171_s7 = scalar_lea.sflag [#allocation7], %s871_s25  ;;  %s685_s8 = scalar_lea.vmem %s186_s3, 32 }
  0x27   : > { %p686_p12 = scmp.ne.s32.totalorder %s186_s3, %s685_s8  ;;  %s787_s30 = smov [#allocation6]  }
  0x28   : > { %s690_s4 = sshll.u32 %s787_s30, 4  ;;  %s691_s4 = int_to_ptr.vmem [resolvable:$false] %s690_s4 }
  0x29   : > { %p688_p6 = pnand %p686_p12, %p646_p3  ;;  %s692_s6 = scalar_lea.vmem %s691_s4, 64 }
  0x2a   : > { %p693_p1 = scmp.lt.s32.totalorder %s186_s3, %s691_s4  ;;  %p694_p2 = scmp.lt.s32.totalorder %s692_s6, %s685_s8 }
  0x2b   : > { %p689_p7 = pneg %p688_p6 }
  0x2c   : > { %p695_p4 = por %p694_p2, %p693_p1 }
  0x2e   : > { %p696_p10 = pnand %p695_p4, %p689_p7 }
  0x30   : > { %699 = shalt.err (!%p696_p10)
}
  0x31   : > { %576 = dma.hbm_to_vmem [thread:$0]  (!%p880_p0), %s183_s28, 32, %s186_s3, %s171_s7  }
  0x32   : > { %194 = sbr.rel (%p898_p5) target bundleno = 392 (0x188), region = 28  ;;  %s916_s25 = sand.u32 (!%p898_p5), 1, %s768_s10  }
  0x33   : > { %s555_s15 = sshll.u32 (!%p898_p5), %s916_s25, 3  ;;  %s197_s16 = scalar_lea.sflag (!%p898_p5), [#allocation4], %s916_s25 }
  0x34   : > { %s200_s19 = scalar_lea.vmem (!%p898_p5), [#allocation3], %s555_s15 }
  0x37   : > { %751 = dma.done.wait (%p853_p8), %s197_s16, 128  }
  0x38   : > { %753 = vsyncadd (%p853_p8), %s197_s16, 4294967168  ;;  %s556_s5 = sshll.u32 %s916_s25, 1  ;;  %s206_s18 = scalar_lea.sflag [#allocation7], %s916_s25 }
  0x39   : > { %s926_s20 = scalar_lea.vmem [#allocation6], %s556_s5 }
  0x3a   : > { %755 = dma.done.wait (%p853_p8), %s206_s18, 32  }
  0x3b   : > { %757 = vsyncadd (%p853_p8), %s206_s18, 4294967264  ;;  %v244_v0 = vlaneseq  ;;  %v788_v2 = vmov 0.0   ;;  %vm253_vm1 = vcmask 1043456   ;;  %v249_v3 = vld [vmem:[%s200_s19] sm:$0xff]  ;;  %v314_v50 = vld [vmem:[%s926_s20] sm:$0x3] }
  0x3c   : > { %v251_v4 = vcombine.high %v249_v3, %v249_v3  ;;  %v254_v5 = vsel %vm253_vm1, %v249_v3, -inf  ;;  %vm404_vm4 = vcmask 1040384   ;;  %s233_s21 = scalar_lea.vmem [#allocation8], %s916_s25  ;;  %s557_s27 = sshll.u32 %s776_s12, 4 }
  0x3d   : > { %vm932_vm0 = vcmp.lt.s32.totalorder %v244_v0, 256  ;;  %v255_v6 = vrot.slane %v254_v5, 4  ;;  %v942_v42 = vshrl.u32 %v244_v0, 7  ;;  %s434_s26 = sshll.u32 %s233_s21, 4  ;;  %s432_s7 = scalar_lea.hbm %s1005_s2, %s557_s27  ;;  %s958_s26 = int_to_ptr.vmem [resolvable:$true] %s434_s26 }
  0x3e   : > { %248 = vst.msk [vmem:[#allocation2] sm:$0x3] %vm932_vm0, %v788_v2  ;;  %v261_v7 = vsel %vm253_vm1, %v251_v4, -inf  ;;  %s420_s8 = scalar_lea.sflag [#allocation5], %s916_s25  ;;  %s700_s30 = scalar_lea.vmem %s958_s26, 16 }
  0x3f   : > { %v256_v8 = vmax.f32 %v254_v5, %v255_v6  ;;  %v262_v9 = vrot.slane %v261_v7, 4  ;;  %v319_v48 = vsub.s32 0, %v942_v42  ;;  %v323_v52 = vsub.s32 1, %v942_v42  ;;  %p701_p8 = scmp.ne.s32.totalorder %s958_s26, %s700_s30  ;;  %s790_s4 = smov [#allocation8]  }
  0x40   : > { %s704_s12 = sshll.u32 %s790_s4, 4  ;;  %s705_s12 = int_to_ptr.vmem [resolvable:$false] %s704_s12 }
  0x41   : > { %v257_v10 = vrot.slane %v256_v8, 2  ;;  %v263_v11 = vmax.f32 %v261_v7, %v262_v9  ;;  %v320_v54 = vrot.slane %v314_v50, %v319_v48  ;;  %v324_v57 = vrot.slane %v314_v50, %v323_v52  ;;  %p702_p0 = pnand %p701_p8, %p857_p9  ;;  %s706_s6 = scalar_lea.vmem %s705_s12, 32 }
  0x42   : > { %p707_p13 = scmp.lt.s32.totalorder %s958_s26, %s705_s12  ;;  %p708_p5 = scmp.lt.s32.totalorder %s706_s6, %s700_s30 }
  0x43   : > { %v258_v12 = vmax.f32 %v256_v8, %v257_v10  ;;  %v264_v13 = vrot.slane %v263_v11, 2  ;;  %vm325_vm2 = vcmp.eq.s32.totalorder %v942_v42, %v320_v54  ;;  %vm326_vm3 = vcmp.eq.s32.totalorder %v942_v42, %v324_v57  ;;  %p703_p3 = pneg %p702_p0 }
  0x44   : > { %p709_p12 = por %p708_p5, %p707_p13 }
  0x45   : > { %v259_v14 = vrot.slane %v258_v12, 1  ;;  %v265_v15 = vmax.f32 %v263_v11, %v264_v13 }
  0x46   : > { %p710_p6 = pnand %p709_p12, %p703_p3 }
  0x47   : > { %v260_v16 = vmax.f32 %v258_v12, %v259_v14  ;;  %v266_v17 = vrot.slane %v265_v15, 1 }
  0x49   : > { %v267_v18 = vmax.f32 %v265_v15, %v266_v17 }
  0x4b   : > { %v270_v19 = vcombine.low %v260_v16, %v267_v18 }
  0x4d   : > { %v272_v20 = vsub.f32 %v249_v3, %v270_v19 }
  0x4f   : > { %v273_v21 = vmul.f32 1.442695, %v272_v20 }
  0x51   : > { %634 = vpow2.f32 %v273_v21 }
  0x5e   : > { %v635_v22 = vpop.eup %634 }
  0x5f   : > { %v276_v23 = vcombine.high %v635_v22, %v635_v22  ;;  %v278_v24 = vsel %vm253_vm1, %v635_v22, 0.0 }
  0x60   : > { %v279_v25 = vrot.slane %v278_v24, 4 }
  0x61   : > { %v285_v26 = vsel %vm253_vm1, %v276_v23, 0.0 }
  0x62   : > { %v280_v27 = vadd.f32 %v279_v25, %v278_v24  ;;  %v286_v28 = vrot.slane %v285_v26, 4 }
  0x64   : > { %v281_v29 = vrot.slane %v280_v27, 2  ;;  %v287_v30 = vadd.f32 %v286_v28, %v285_v26 }
  0x66   : > { %v282_v31 = vadd.f32 %v281_v29, %v280_v27  ;;  %v288_v32 = vrot.slane %v287_v30, 2 }
  0x68   : > { %v283_v33 = vrot.slane %v282_v31, 1  ;;  %v289_v34 = vadd.f32 %v288_v32, %v287_v30 }
  0x6a   : > { %v284_v35 = vadd.f32 %v283_v33, %v282_v31  ;;  %v290_v36 = vrot.slane %v289_v34, 1 }
  0x6c   : > { %v291_v37 = vadd.f32 %v290_v36, %v289_v34  ;;  %636 = vrcp.f32 %v284_v35 }
  0x6d   : > { %638 = vlog2.f32 %v284_v35 }
  0x6e   : > { %640 = vrcp.f32 %v291_v37 }
  0x6f   : > { %642 = vlog2.f32 %v291_v37 }
  0x79   : > { %v637_v38 = vpop.eup %636 }
  0x7a   : > { %v639_v39 = vpop.eup %638 }
  0x7b   : > { %v641_v40 = vpop.eup %640  ;;  %v301_v41 = vmul.f32 0.6931472, %v639_v39 }
  0x7c   : > { %v643_v43 = vpop.eup %642  ;;  %v296_v44 = vcombine.low %v637_v38, %v641_v40  ;;  %v364_v38 = vld [vmem:[#allocation2] sm:$0x3] }
  0x7d   : > { %v303_v45 = vmul.f32 0.6931472, %v643_v43 }
  0x7e   : > { %v298_v46 = vmul.f32 %v635_v22, %v296_v44 }
  0x7f   : > { %v306_v47 = vcombine.low %v301_v41, %v303_v45 }
  0x80   : > { %v299_v49 = vadd.f32 1e-08, %v298_v46 }
  0x81   : > { %v308_v51 = vsub.f32 %v272_v20, %v306_v47  ;;  %v789_v20 = vmov 1966171168  }
  0x82   : > { %v310_v53 = vsub.f32 1.0, %v299_v49  ;;  %v369_v21 = vunpack.c.l.s4 %v789_v20 }
  0x83   : > { %v309_v55 = vmax.f32 %v308_v51, -18.420681 }
  0x84   : > { %v311_v56 = vmul.f32 %v310_v53, %v310_v53  ;;  %v370_v30 = vunpack.c.0.s8 %v369_v21 }
  0x86   : > { %v312_v58 = vmul.f32 -0.5, %v311_v56  ;;  %v373_v35 = vsub.s32 %v370_v30, %v942_v42 }
  0x88   : > { %v313_v59 = vmul.f32 %v312_v58, %v309_v55 }
  0x8a   : > { %v328_v60 = vcombine.high %v313_v59, %v313_v59  ;;  %v330_v61 = vsel %vm325_vm2, %v313_v59, 0.0  ;;  %v346_v62 = vsel %vm253_vm1, %v313_v59, 0.0 }
  0x8b   : > { %v332_v63 = vsel %vm253_vm1, %v330_v61, 0.0  ;;  %v347_v0 = vrot.slane %v346_v62, 4 }
  0x8c   : > { %v331_v2 = vsel %vm326_vm3, %v328_v60, 0.0  ;;  %v333_v3 = vrot.slane %v332_v63, 4  ;;  %v353_v4 = vsel %vm253_vm1, %v328_v60, 0.0 }
  0x8d   : > { %v339_v5 = vsel %vm253_vm1, %v331_v2, 0.0  ;;  %v348_v6 = vadd.f32 %v347_v0, %v346_v62  ;;  %v354_v7 = vrot.slane %v353_v4, 4 }
  0x8e   : > { %v334_v8 = vadd.f32 %v333_v3, %v332_v63  ;;  %v340_v9 = vrot.slane %v339_v5, 4 }
  0x8f   : > { %v349_v10 = vrot.slane %v348_v6, 2  ;;  %v355_v11 = vadd.f32 %v354_v7, %v353_v4 }
  0x90   : > { %v335_v12 = vrot.slane %v334_v8, 2  ;;  %v341_v13 = vadd.f32 %v340_v9, %v339_v5 }
  0x91   : > { %v350_v14 = vadd.f32 %v349_v10, %v348_v6  ;;  %v356_v15 = vrot.slane %v355_v11, 2 }
  0x92   : > { %v336_v16 = vadd.f32 %v335_v12, %v334_v8  ;;  %v342_v17 = vrot.slane %v341_v13, 2 }
  0x93   : > { %v351_v18 = vrot.slane %v350_v14, 1  ;;  %v357_v19 = vadd.f32 %v356_v15, %v355_v11 }
  0x94   : > { %v337_v22 = vrot.slane %v336_v16, 1  ;;  %v343_v23 = vadd.f32 %v342_v17, %v341_v13 }
  0x95   : > { %v352_v24 = vadd.f32 %v351_v18, %v350_v14  ;;  %v358_v25 = vrot.slane %v357_v19, 1 }
  0x96   : > { %v338_v26 = vadd.f32 %v337_v22, %v336_v16  ;;  %v344_v27 = vrot.slane %v343_v23, 1 }
  0x97   : > { %v359_v28 = vadd.f32 %v358_v25, %v357_v19  ;;  %v360_v29 = vmul.f32 1e-06, %v352_v24 }
  0x98   : > { %v345_v31 = vadd.f32 %v344_v27, %v343_v23 }
  0x99   : > { %v361_v32 = vmul.f32 1e-06, %v359_v28  ;;  %v362_v33 = vadd.f32 %v360_v29, %v338_v26 }
  0x9b   : > { %v363_v34 = vadd.f32 %v361_v32, %v345_v31 }
  0x9d   : > { %v367_v36 = vcombine.low %v362_v33, %v363_v34 }
  0x9f   : > { %v374_v37 = vrot.slane %v367_v36, %v373_v35 }
  0xa1   : > { %v381_v39 = vrot.slane %v374_v37, %v373_v35 }
  0xa3   : > { %v383_v40 = vadd.f32 %v381_v39, %v364_v38 }
  0xa5   : > { %388 = vst.msk [vmem:[#allocation2] sm:$0x3] %vm932_vm0, %v383_v40 }
  0xac   : > { %v392_v41 = vld [vmem:[#allocation2] sm:$0x3] }
  0xad   : > { %v397_v43 = vrot.slane %v392_v41, %v319_v48  ;;  %v401_v44 = vrot.slane %v392_v41, %v323_v52 }
  0xaf   : > { %v405_v45 = vsel %vm404_vm4, %v397_v43, 0.0  ;;  %v406_v46 = vsel %vm404_vm4, %v401_v44, 0.0 }
  0xb0   : > { %v407_v47 = vadd.f32 %v406_v46, %v405_v45 }
  0xb2   : > { %408 = vadd.xlane.f32.xlu0 %v407_v47 }
 0x13b   : > { %v409_v49 = vpop.xlane.xlu0 %408 }
 0x13c   : > { %v410_v42 = vrot.slane %v409_v49, 4 }
 0x13e   : > { %v411_v50 = vadd.f32 %v410_v42, %v409_v49 }
 0x140   : > { %v412_v51 = vrot.slane %v411_v50, 2 }
 0x142   : > { %v413_v53 = vadd.f32 %v412_v51, %v411_v50 }
 0x144   : > { %v414_v54 = vrot.slane %v413_v53, 1 }
 0x146   : > { %v415_v1 = vadd.f32 %v414_v54, %v413_v53 }
 0x148   : > { %562 = vpush %v415_v1 }
 0x179   : > { %s563_s28 = spop %562 }
 0x17a   : > { %v417_v48 = vstv %s563_s28 }
 0x17b   : > { %418 = vst [vmem:[%s233_s21] sm:$0x1] %v417_v48 }
 0x17c   : > { %713 = shalt.err (!%p710_p6)
}
 0x17d   : > { %s714_s15 = scalar_lea.hbm %s432_s7, 16  ;;  %s718_s19 = scalar_lea.hbm %s1005_s2, 32 }
 0x17e   : > { %p715_p7 = scmp.ne.s32.totalorder %s432_s7, %s714_s15  ;;  %p719_p4 = scmp.lt.s32.totalorder %s432_s7, %s1005_s2 }
 0x17f   : > { %p720_p10 = scmp.lt.s32.totalorder %s718_s19, %s714_s15 }
 0x180   : > { %p716_p1 = pnand %p715_p7, %p857_p9 }
 0x181   : > { %p721_p8 = por %p720_p10, %p719_p4 }
 0x182   : > { %p717_p2 = pneg %p716_p1 }
 0x184   : > { %p722_p0 = pnand %p721_p8, %p717_p2 }
 0x186   : > { %725 = shalt.err (!%p722_p0)
}
 0x187   : > { %568 = dma.vmem_to_hbm [thread:$0]  (%p857_p9), %s958_s26, 16, %s432_s7, %s420_s8  }
 0x188 PF: > { %s446_s20 = sand.u32 1, %s764_s9   ;;  %p1014_p3 = scmp.ge.s32.totalorder %s784_s14, 2 }
 0x189   : > { %s447_s21 = scalar_lea.sflag [#allocation5], %s446_s20 }
 0x18a   : > { %p578_p13 = pnand %p1014_p3, %p864_p11 }
 0x18c   : > { %p579_p5 = pneg %p578_p13 }
 0x18e   : > { %759 = dma.done.wait (%p579_p5), %s447_s21, 16  }
 0x18f   : > { %761 = vsyncadd (%p579_p5), %s447_s21, 4294967280  ;;  %s21_s14 = sadd.s32 1, %s784_s14   ;;  %s1015_s9 = smov %s768_s10 }
 0x190   : > { %p18_p12 = scmp.ge.s32.totalorder %s21_s14, 4   ;;  %s1016_s10 = smov %s772_s11 }
 0x191   : > { %s1017_s11 = smov %s862_s23  ;;  %s1018_s12 = smov %s780_s13 }
 0x192   : > { %s1019_s13 = smov %s1021_s17  ;;  %20 = sbr.rel (!%p18_p12) target bundleno = 8 (0x8), region = 94 }
 0x197   :  { %451 = vsyncpa [#allocation4], 1 }
 0x198   :  { %453 = vsyncpa [#allocation4 + $0x1], 1 }
 0x199   :  { %454 = vsyncpa [#allocation7], 1 }
 0x19a   :  { %456 = vsyncpa [#allocation7 + $0x1], 1 }
 0x19b   :  { %457 = vsyncpa [#allocation5], 1 }
 0x19c   :  { %459 = vsyncpa [#allocation5 + $0x1], 1 }

</bundles_post_ra>
